<compile_context>
chip_gen: v5e
topology: v5e:2x2
jax: 0.10.0
libtpu: 0.0.40
codegen_flags: <defaults>
</compile_context>

<pallas_src>
import functools

import jax
import jax.numpy as jnp
from jax.experimental import pallas as pl
from jax.experimental.pallas import tpu as pltpu


# ----------------------------------------------------------------------------
# Pallas kernel: one batch element per grid step, channels on sublanes,
# flattened H*W on lanes.
# ----------------------------------------------------------------------------
def _ru_kernel(x_ref, m_ref, w1_ref, b1_ref, w2_ref, b2_ref, wi_ref, bi_ref,
               o_ref, x1_col, x2_col, *, W):
    """RU forward for one batch element.

      x_ref  : (1, Cin, N)   f32   input image, NCHW flattened (N = H*W)
      m_ref  : (9, N)        f32   per-tap boundary-validity masks (shared)
      w1_ref : (Cout, 9*Cin) bf16  conv1 weights * BN1 scale, im2col layout
      b1_ref : (Cout, 1)     f32   BN1 shift
      w2_ref : (Cout, 9*Cout) bf16 conv2 weights * BN2 scale, im2col layout
      b2_ref : (Cout, 1)     f32   BN2 shift
      wi_ref : (Cout, Cin)   bf16  1x1 identity conv weights (transposed)
      bi_ref : (Cout, 1)     f32   identity conv bias
      o_ref  : (1, Cout, N)  f32   output (NCHW flattened)
      x1_col : (9*Cin, N)    f32   VMEM im2col scratch for conv1
      x2_col : (9*Cout, N)   f32   VMEM im2col scratch for conv2
    """
    Cin, N = x_ref.shape[1], x_ref.shape[2]
    Cout = o_ref.shape[1]

    x = x_ref[0]             # (Cin, N) f32
    masks = m_ref[...]       # (9, N)   f32

    def build_im2col(src, c, col_ref):
        # Each 3x3 tap of the zero-padded conv is a pure lane shift of the
        # flattened image (XLU roll, overlaps MXU work) times a boundary mask;
        # wrapped-around lanes are always covered by the mask, so the roll is safe.
        for k in range(9):
            dy, dx = k // 3, k % 3
            s = (dy - 1) * W + (dx - 1)          # flat source offset of this tap
            shifted = src if s == 0 else pltpu.roll(src, shift=(-s) % N, axis=1)
            col_ref[k * c:(k + 1) * c, :] = shifted * masks[k:k + 1, :]

    # ---- residual branch: conv3x3 (BN1 scale folded into w1) + shift + ReLU ----
    build_im2col(x, Cin, x1_col)
    acc1 = jnp.dot(w1_ref[...], x1_col[...].astype(jnp.bfloat16),
                   preferred_element_type=jnp.float32)            # (Cout, N) f32
    h1 = jnp.maximum(acc1 + b1_ref[...], 0.0)

    # ---- residual branch: conv3x3 (BN2 scale folded into w2) + shift -----------
    build_im2col(h1, Cout, x2_col)
    res = jnp.dot(w2_ref[...], x2_col[...].astype(jnp.bfloat16),
                  preferred_element_type=jnp.float32) + b2_ref[...]

    # ---- identity branch: conv1x1 + bias ----------------------------------------
    ide = jnp.dot(wi_ref[...], x.astype(jnp.bfloat16),
                  preferred_element_type=jnp.float32) + bi_ref[...]

    # ---- add + final ReLU; (Cout, N) store is lane-dense (N multiple of 128) -----
    o_ref[0] = jnp.maximum(ide + res, 0.0).astype(o_ref.dtype)


# ----------------------------------------------------------------------------
# Wrapper: BN folding into weights, im2col weight layout, tap masks, pallas_call.
# Input/output stay in PyTorch NCHW — no transposes or spatial padding needed.
# ----------------------------------------------------------------------------
def ru_forward(x_nchw, params):
    B, Cin, H, W = x_nchw.shape
    N = H * W
    Cout = params["wi"].shape[-1]
    eps = 1e-5

    def fold_bn(gamma, beta, mean, var):
        scale = gamma / jnp.sqrt(var + eps)
        shift = beta - mean * scale
        return scale, shift

    s1, sh1 = fold_bn(params["g1"], params["be1"], params["m1"], params["v1"])
    s2, sh2 = fold_bn(params["g2"], params["be2"], params["m2"], params["v2"])

    # Fold BN scales into the conv weights; flatten (3,3,Cin,Cout) HWIO ->
    # (Cout, 9*Cin) matching the kernel's im2col row order (dy, dx, ci); bf16 for the MXU.
    w1f = jnp.transpose(params["w1"] * s1, (3, 0, 1, 2)).reshape(Cout, 9 * Cin)
    w2f = jnp.transpose(params["w2"] * s2, (3, 0, 1, 2)).reshape(Cout, 9 * Cout)
    wi_t = params["wi"].T                                           # (Cout, Cin)
    w1f, w2f, wi_t = (w1f.astype(jnp.bfloat16), w2f.astype(jnp.bfloat16),
                      wi_t.astype(jnp.bfloat16))

    b1 = sh1.reshape(Cout, 1).astype(jnp.float32)
    b2 = sh2.reshape(Cout, 1).astype(jnp.float32)
    bi = params["bi"].reshape(Cout, 1).astype(jnp.float32)

    # Per-tap validity masks over the flattened spatial axis (handles zero padding
    # and the roll wrap-around in one shot).
    yy = jnp.arange(N, dtype=jnp.int32) // W
    xx = jnp.arange(N, dtype=jnp.int32) % W
    masks = jnp.stack([
        ((yy >= 1 - dy) & (yy <= H - dy) & (xx >= 1 - dx) & (xx <= W - dx))
        for dy in range(3) for dx in range(3)
    ]).astype(jnp.float32)                                          # (9, N)

    x_flat = x_nchw.reshape(B, Cin, N).astype(jnp.float32)

    flops = 2 * B * N * (9 * Cin * Cout + 9 * Cout * Cout + Cin * Cout)
    bytes_accessed = (x_flat.size * 4 + masks.size * 4
                      + (w1f.size + w2f.size + wi_t.size) * 2
                      + (b1.size + b2.size + bi.size) * 4
                      + B * Cout * N * 4)

    out_flat = pl.pallas_call(
        functools.partial(_ru_kernel, W=W),
        out_shape=jax.ShapeDtypeStruct((B, Cout, N), jnp.float32),
        grid=(B,),
        in_specs=[
            pl.BlockSpec((1, Cin, N), lambda b: (b, 0, 0)),        # x
            pl.BlockSpec((9, N), lambda b: (0, 0)),                # masks
            pl.BlockSpec((Cout, 9 * Cin), lambda b: (0, 0)),       # w1 (scaled)
            pl.BlockSpec((Cout, 1), lambda b: (0, 0)),             # b1
            pl.BlockSpec((Cout, 9 * Cout), lambda b: (0, 0)),      # w2 (scaled)
            pl.BlockSpec((Cout, 1), lambda b: (0, 0)),             # b2
            pl.BlockSpec((Cout, Cin), lambda b: (0, 0)),           # wi^T
            pl.BlockSpec((Cout, 1), lambda b: (0, 0)),             # bi
        ],
        out_specs=pl.BlockSpec((1, Cout, N), lambda b: (b, 0, 0)),
        scratch_shapes=[pltpu.VMEM((9 * Cin, N), jnp.float32),
                        pltpu.VMEM((9 * Cout, N), jnp.float32)],
        compiler_params=pltpu.CompilerParams(
            dimension_semantics=("parallel",)),                    # batch over 2 TCs on v7x
        cost_estimate=pl.CostEstimate(flops=flops, transcendentals=0,
                                      bytes_accessed=bytes_accessed),
    )(x_flat, masks, w1f, b1, w2f, b2, wi_t, bi)

    return out_flat.reshape(B, Cout, H, W)


# ----------------------------------------------------------------------------
# Pure-JAX reference (same semantics) for verification.
# ----------------------------------------------------------------------------
def ru_reference(x_nchw, params):
    eps = 1e-5
    x = jnp.transpose(x_nchw, (0, 2, 3, 1)).astype(jnp.float32)

    def conv(x, w):
        return jax.lax.conv_general_dilated(
            x, w, window_strides=(1, 1), padding="SAME",
            dimension_numbers=("NHWC", "HWIO", "NHWC"))

    def bn(x, gamma, beta, mean, var):
        return (x - mean) / jnp.sqrt(var + eps) * gamma + beta

    h = jax.nn.relu(bn(conv(x, params["w1"]),
                       params["g1"], params["be1"], params["m1"], params["v1"]))
    res = bn(conv(h, params["w2"]),
             params["g2"], params["be2"], params["m2"], params["v2"])
    wi_hwio = params["wi"].reshape(1, 1, *params["wi"].shape)
    ide = conv(x, wi_hwio) + params["bi"]
    out = jax.nn.relu(ide + res)
    return jnp.transpose(out, (0, 3, 1, 2))


def make_params(key, cin, cout):
    ks = jax.random.split(key, 12)
    return {
        "w1": jax.random.normal(ks[0], (3, 3, cin, cout), jnp.float32) * 0.1,
        "g1": 1.0 + 0.1 * jax.random.normal(ks[1], (cout,), jnp.float32),
        "be1": 0.1 * jax.random.normal(ks[2], (cout,), jnp.float32),
        "m1": 0.1 * jax.random.normal(ks[3], (cout,), jnp.float32),
        "v1": 0.5 + jnp.abs(jax.random.normal(ks[4], (cout,), jnp.float32)),
        "w2": jax.random.normal(ks[5], (3, 3, cout, cout), jnp.float32) * 0.1,
        "g2": 1.0 + 0.1 * jax.random.normal(ks[6], (cout,), jnp.float32),
        "be2": 0.1 * jax.random.normal(ks[7], (cout,), jnp.float32),
        "m2": 0.1 * jax.random.normal(ks[8], (cout,), jnp.float32),
        "v2": 0.5 + jnp.abs(jax.random.normal(ks[9], (cout,), jnp.float32)),
        "wi": jax.random.normal(ks[10], (cin, cout), jnp.float32) * 0.1,
        "bi": 0.1 * jax.random.normal(ks[11], (cout,), jnp.float32),
    }


if __name__ == "__main__":
    key = jax.random.PRNGKey(0)
    kx, kp = jax.random.split(key)

    B, Cin, Cout, H, W = 2, 4, 8, 16, 16
    x = jax.random.normal(kx, (B, Cin, H, W), jnp.float32)   # PyTorch NCHW input
    params = make_params(kp, Cin, Cout)

    out = jax.block_until_ready(ru_forward(x, params))
    ref = jax.block_until_ready(ru_reference(x, params))

    assert out.shape == (B, Cout, H, W), out.shape
    max_err = float(jnp.max(jnp.abs(out - ref)))
    # bf16 MXU operands (with f32 accumulation) vs. the pure-f32 XLA reference.
    assert max_err < 5e-2, f"mismatch vs reference: {max_err}"

    print("KERNEL_OK")
</pallas_src>

<mosaic_0001>
module attributes {stable_mosaic.version = 11 : i64} {
  func.func @_ru_kernel(%arg0: i32, %arg1: memref<1x4x256xf32, #tpu.memory_space<vmem>>, %arg2: memref<9x256xf32, #tpu.memory_space<vmem>>, %arg3: memref<8x36xbf16, #tpu.memory_space<vmem>>, %arg4: memref<8x1xf32, #tpu.memory_space<vmem>>, %arg5: memref<8x72xbf16, #tpu.memory_space<vmem>>, %arg6: memref<8x1xf32, #tpu.memory_space<vmem>>, %arg7: memref<8x4xbf16, #tpu.memory_space<vmem>>, %arg8: memref<8x1xf32, #tpu.memory_space<vmem>>, %arg9: memref<1x8x256xf32, #tpu.memory_space<vmem>>, %arg10: memref<36x256xf32, #tpu.memory_space<vmem>>, %arg11: memref<72x256xf32, #tpu.memory_space<vmem>>) attributes {dimension_semantics = [#tpu.dimension_semantics<parallel>], iteration_bounds = array<i64: 2>, scalar_prefetch = 0 : i64, scratch_operands = 2 : i64, tpu.core_type = #tpu.core_type<tc>, window_params = [{transform_indices = @transform_0, window_bounds = array<i64: 1, 4, 256>}, {pipeline_mode = #tpu.pipeline_mode<synchronous>, transform_indices = @transform_1, window_bounds = array<i64: 9, 256>}, {pipeline_mode = #tpu.pipeline_mode<synchronous>, transform_indices = @transform_2, window_bounds = array<i64: 8, 36>}, {pipeline_mode = #tpu.pipeline_mode<synchronous>, transform_indices = @transform_3, window_bounds = array<i64: 8, 1>}, {pipeline_mode = #tpu.pipeline_mode<synchronous>, transform_indices = @transform_4, window_bounds = array<i64: 8, 72>}, {pipeline_mode = #tpu.pipeline_mode<synchronous>, transform_indices = @transform_5, window_bounds = array<i64: 8, 1>}, {pipeline_mode = #tpu.pipeline_mode<synchronous>, transform_indices = @transform_6, window_bounds = array<i64: 8, 4>}, {pipeline_mode = #tpu.pipeline_mode<synchronous>, transform_indices = @transform_7, window_bounds = array<i64: 8, 1>}, {transform_indices = @transform_8, window_bounds = array<i64: 1, 8, 256>}]} {
    %c0 = arith.constant 0 : index
    %c0_0 = arith.constant 0 : index
    %c0_1 = arith.constant 0 : index
    %0 = vector.load %arg1[%c0, %c0_0, %c0_1] : memref<1x4x256xf32, #tpu.memory_space<vmem>>, vector<1x4x256xf32>
    %1 = vector.shape_cast %0 : vector<1x4x256xf32> to vector<4x256xf32>
    %c0_2 = arith.constant 0 : index
    %c0_3 = arith.constant 0 : index
    %2 = vector.load %arg2[%c0_2, %c0_3] : memref<9x256xf32, #tpu.memory_space<vmem>>, vector<9x256xf32>
    %c17_i32 = arith.constant 17 : i32
    %3 = tpu.dynamic_rotate %1 by %c17_i32 dim 1 : vector<4x256xf32>, i32 -> vector<4x256xf32>
    %4 = vector.extract_strided_slice %2 {offsets = [0, 0], sizes = [1, 256], strides = [1, 1]} : vector<9x256xf32> to vector<1x256xf32>
    %5 = vector.broadcast %4 : vector<1x256xf32> to vector<4x256xf32>
    %6 = arith.mulf %3, %5 : vector<4x256xf32>
    %c0_4 = arith.constant 0 : index
    %c0_5 = arith.constant 0 : index
    %7 = vector.load %arg10[%c0_4, %c0_5] : memref<36x256xf32, #tpu.memory_space<vmem>>, vector<4x256xf32>
    tpu.vector_store %arg10[%c0_4, %c0_5], %6 {strides = array<i32>} : memref<36x256xf32, #tpu.memory_space<vmem>>, vector<4x256xf32>,
    %c16_i32 = arith.constant 16 : i32
    %8 = tpu.dynamic_rotate %1 by %c16_i32 dim 1 : vector<4x256xf32>, i32 -> vector<4x256xf32>
    %9 = vector.extract_strided_slice %2 {offsets = [1, 0], sizes = [1, 256], strides = [1, 1]} : vector<9x256xf32> to vector<1x256xf32>
    %10 = vector.broadcast %9 : vector<1x256xf32> to vector<4x256xf32>
    %11 = arith.mulf %8, %10 : vector<4x256xf32>
    %c4 = arith.constant 4 : index
    %c0_6 = arith.constant 0 : index
    %12 = vector.load %arg10[%c4, %c0_6] : memref<36x256xf32, #tpu.memory_space<vmem>>, vector<4x256xf32>
    tpu.vector_store %arg10[%c4, %c0_6], %11 {strides = array<i32>} : memref<36x256xf32, #tpu.memory_space<vmem>>, vector<4x256xf32>,
    %c15_i32 = arith.constant 15 : i32
    %13 = tpu.dynamic_rotate %1 by %c15_i32 dim 1 : vector<4x256xf32>, i32 -> vector<4x256xf32>
    %14 = vector.extract_strided_slice %2 {offsets = [2, 0], sizes = [1, 256], strides = [1, 1]} : vector<9x256xf32> to vector<1x256xf32>
    %15 = vector.broadcast %14 : vector<1x256xf32> to vector<4x256xf32>
    %16 = arith.mulf %13, %15 : vector<4x256xf32>
    %c8 = arith.constant 8 : index
    %c0_7 = arith.constant 0 : index
    %17 = vector.load %arg10[%c8, %c0_7] : memref<36x256xf32, #tpu.memory_space<vmem>>, vector<4x256xf32>
    tpu.vector_store %arg10[%c8, %c0_7], %16 {strides = array<i32>} : memref<36x256xf32, #tpu.memory_space<vmem>>, vector<4x256xf32>,
    %c1_i32 = arith.constant 1 : i32
    %18 = tpu.dynamic_rotate %1 by %c1_i32 dim 1 : vector<4x256xf32>, i32 -> vector<4x256xf32>
    %19 = vector.extract_strided_slice %2 {offsets = [3, 0], sizes = [1, 256], strides = [1, 1]} : vector<9x256xf32> to vector<1x256xf32>
    %20 = vector.broadcast %19 : vector<1x256xf32> to vector<4x256xf32>
    %21 = arith.mulf %18, %20 : vector<4x256xf32>
    %c12 = arith.constant 12 : index
    %c0_8 = arith.constant 0 : index
    %22 = vector.load %arg10[%c12, %c0_8] : memref<36x256xf32, #tpu.memory_space<vmem>>, vector<4x256xf32>
    tpu.vector_store %arg10[%c12, %c0_8], %21 {strides = array<i32>} : memref<36x256xf32, #tpu.memory_space<vmem>>, vector<4x256xf32>,
    %23 = vector.extract_strided_slice %2 {offsets = [4, 0], sizes = [1, 256], strides = [1, 1]} : vector<9x256xf32> to vector<1x256xf32>
    %24 = vector.broadcast %23 : vector<1x256xf32> to vector<4x256xf32>
    %25 = arith.mulf %1, %24 : vector<4x256xf32>
    %c16 = arith.constant 16 : index
    %c0_9 = arith.constant 0 : index
    %26 = vector.load %arg10[%c16, %c0_9] : memref<36x256xf32, #tpu.memory_space<vmem>>, vector<4x256xf32>
    tpu.vector_store %arg10[%c16, %c0_9], %25 {strides = array<i32>} : memref<36x256xf32, #tpu.memory_space<vmem>>, vector<4x256xf32>,
    %c255_i32 = arith.constant 255 : i32
    %27 = tpu.dynamic_rotate %1 by %c255_i32 dim 1 : vector<4x256xf32>, i32 -> vector<4x256xf32>
    %28 = vector.extract_strided_slice %2 {offsets = [5, 0], sizes = [1, 256], strides = [1, 1]} : vector<9x256xf32> to vector<1x256xf32>
    %29 = vector.broadcast %28 : vector<1x256xf32> to vector<4x256xf32>
    %30 = arith.mulf %27, %29 : vector<4x256xf32>
    %c20 = arith.constant 20 : index
    %c0_10 = arith.constant 0 : index
    %31 = vector.load %arg10[%c20, %c0_10] : memref<36x256xf32, #tpu.memory_space<vmem>>, vector<4x256xf32>
    tpu.vector_store %arg10[%c20, %c0_10], %30 {strides = array<i32>} : memref<36x256xf32, #tpu.memory_space<vmem>>, vector<4x256xf32>,
    %c241_i32 = arith.constant 241 : i32
    %32 = tpu.dynamic_rotate %1 by %c241_i32 dim 1 : vector<4x256xf32>, i32 -> vector<4x256xf32>
    %33 = vector.extract_strided_slice %2 {offsets = [6, 0], sizes = [1, 256], strides = [1, 1]} : vector<9x256xf32> to vector<1x256xf32>
    %34 = vector.broadcast %33 : vector<1x256xf32> to vector<4x256xf32>
    %35 = arith.mulf %32, %34 : vector<4x256xf32>
    %c24 = arith.constant 24 : index
    %c0_11 = arith.constant 0 : index
    %36 = vector.load %arg10[%c24, %c0_11] : memref<36x256xf32, #tpu.memory_space<vmem>>, vector<4x256xf32>
    tpu.vector_store %arg10[%c24, %c0_11], %35 {strides = array<i32>} : memref<36x256xf32, #tpu.memory_space<vmem>>, vector<4x256xf32>,
    %c240_i32 = arith.constant 240 : i32
    %37 = tpu.dynamic_rotate %1 by %c240_i32 dim 1 : vector<4x256xf32>, i32 -> vector<4x256xf32>
    %38 = vector.extract_strided_slice %2 {offsets = [7, 0], sizes = [1, 256], strides = [1, 1]} : vector<9x256xf32> to vector<1x256xf32>
    %39 = vector.broadcast %38 : vector<1x256xf32> to vector<4x256xf32>
    %40 = arith.mulf %37, %39 : vector<4x256xf32>
    %c28 = arith.constant 28 : index
    %c0_12 = arith.constant 0 : index
    %41 = vector.load %arg10[%c28, %c0_12] : memref<36x256xf32, #tpu.memory_space<vmem>>, vector<4x256xf32>
    tpu.vector_store %arg10[%c28, %c0_12], %40 {strides = array<i32>} : memref<36x256xf32, #tpu.memory_space<vmem>>, vector<4x256xf32>,
    %c239_i32 = arith.constant 239 : i32
    %42 = tpu.dynamic_rotate %1 by %c239_i32 dim 1 : vector<4x256xf32>, i32 -> vector<4x256xf32>
    %43 = vector.extract_strided_slice %2 {offsets = [8, 0], sizes = [1, 256], strides = [1, 1]} : vector<9x256xf32> to vector<1x256xf32>
    %44 = vector.broadcast %43 : vector<1x256xf32> to vector<4x256xf32>
    %45 = arith.mulf %42, %44 : vector<4x256xf32>
    %c32 = arith.constant 32 : index
    %c0_13 = arith.constant 0 : index
    %46 = vector.load %arg10[%c32, %c0_13] : memref<36x256xf32, #tpu.memory_space<vmem>>, vector<4x256xf32>
    tpu.vector_store %arg10[%c32, %c0_13], %45 {strides = array<i32>} : memref<36x256xf32, #tpu.memory_space<vmem>>, vector<4x256xf32>,
    %c0_14 = arith.constant 0 : index
    %c0_15 = arith.constant 0 : index
    %47 = vector.load %arg3[%c0_14, %c0_15] : memref<8x36xbf16, #tpu.memory_space<vmem>>, vector<8x36xbf16>
    %c0_16 = arith.constant 0 : index
    %c0_17 = arith.constant 0 : index
    %48 = vector.load %arg10[%c0_16, %c0_17] : memref<36x256xf32, #tpu.memory_space<vmem>>, vector<36x256xf32>
    %49 = arith.truncf %48 : vector<36x256xf32> to vector<36x256xbf16>
    %cst = arith.constant dense<0.000000e+00> : vector<8x256xf32>
    %50 = tpu.matmul %47, %49, %cst {dimension_numbers = #tpu.dot_dimension_numbers<[1], [0], [0], [1], [0, 0, 1, 1], [], []>} : vector<8x36xbf16>, vector<36x256xbf16>, vector<8x256xf32> -> vector<8x256xf32>
    %c0_18 = arith.constant 0 : index
    %c0_19 = arith.constant 0 : index
    %51 = vector.load %arg4[%c0_18, %c0_19] : memref<8x1xf32, #tpu.memory_space<vmem>>, vector<8x1xf32>
    %52 = vector.broadcast %51 : vector<8x1xf32> to vector<8x256xf32>
    %53 = arith.addf %50, %52 : vector<8x256xf32>
    %cst_20 = arith.constant 0.000000e+00 : f32
    %54 = vector.broadcast %cst_20 : f32 to vector<8x256xf32>
    %55 = arith.maximumf %53, %54 : vector<8x256xf32>
    %c17_i32_21 = arith.constant 17 : i32
    %56 = tpu.dynamic_rotate %55 by %c17_i32_21 dim 1 : vector<8x256xf32>, i32 -> vector<8x256xf32>
    %57 = vector.extract_strided_slice %2 {offsets = [0, 0], sizes = [1, 256], strides = [1, 1]} : vector<9x256xf32> to vector<1x256xf32>
    %58 = vector.broadcast %57 : vector<1x256xf32> to vector<8x256xf32>
    %59 = arith.mulf %56, %58 : vector<8x256xf32>
    %c0_22 = arith.constant 0 : index
    %c0_23 = arith.constant 0 : index
    %60 = vector.load %arg11[%c0_22, %c0_23] : memref<72x256xf32, #tpu.memory_space<vmem>>, vector<8x256xf32>
    tpu.vector_store %arg11[%c0_22, %c0_23], %59 {strides = array<i32>} : memref<72x256xf32, #tpu.memory_space<vmem>>, vector<8x256xf32>,
    %c16_i32_24 = arith.constant 16 : i32
    %61 = tpu.dynamic_rotate %55 by %c16_i32_24 dim 1 : vector<8x256xf32>, i32 -> vector<8x256xf32>
    %62 = vector.extract_strided_slice %2 {offsets = [1, 0], sizes = [1, 256], strides = [1, 1]} : vector<9x256xf32> to vector<1x256xf32>
    %63 = vector.broadcast %62 : vector<1x256xf32> to vector<8x256xf32>
    %64 = arith.mulf %61, %63 : vector<8x256xf32>
    %c8_25 = arith.constant 8 : index
    %c0_26 = arith.constant 0 : index
    %65 = vector.load %arg11[%c8_25, %c0_26] : memref<72x256xf32, #tpu.memory_space<vmem>>, vector<8x256xf32>
    tpu.vector_store %arg11[%c8_25, %c0_26], %64 {strides = array<i32>} : memref<72x256xf32, #tpu.memory_space<vmem>>, vector<8x256xf32>,
    %c15_i32_27 = arith.constant 15 : i32
    %66 = tpu.dynamic_rotate %55 by %c15_i32_27 dim 1 : vector<8x256xf32>, i32 -> vector<8x256xf32>
    %67 = vector.extract_strided_slice %2 {offsets = [2, 0], sizes = [1, 256], strides = [1, 1]} : vector<9x256xf32> to vector<1x256xf32>
    %68 = vector.broadcast %67 : vector<1x256xf32> to vector<8x256xf32>
    %69 = arith.mulf %66, %68 : vector<8x256xf32>
    %c16_28 = arith.constant 16 : index
    %c0_29 = arith.constant 0 : index
    %70 = vector.load %arg11[%c16_28, %c0_29] : memref<72x256xf32, #tpu.memory_space<vmem>>, vector<8x256xf32>
    tpu.vector_store %arg11[%c16_28, %c0_29], %69 {strides = array<i32>} : memref<72x256xf32, #tpu.memory_space<vmem>>, vector<8x256xf32>,
    %c1_i32_30 = arith.constant 1 : i32
    %71 = tpu.dynamic_rotate %55 by %c1_i32_30 dim 1 : vector<8x256xf32>, i32 -> vector<8x256xf32>
    %72 = vector.extract_strided_slice %2 {offsets = [3, 0], sizes = [1, 256], strides = [1, 1]} : vector<9x256xf32> to vector<1x256xf32>
    %73 = vector.broadcast %72 : vector<1x256xf32> to vector<8x256xf32>
    %74 = arith.mulf %71, %73 : vector<8x256xf32>
    %c24_31 = arith.constant 24 : index
    %c0_32 = arith.constant 0 : index
    %75 = vector.load %arg11[%c24_31, %c0_32] : memref<72x256xf32, #tpu.memory_space<vmem>>, vector<8x256xf32>
    tpu.vector_store %arg11[%c24_31, %c0_32], %74 {strides = array<i32>} : memref<72x256xf32, #tpu.memory_space<vmem>>, vector<8x256xf32>,
    %76 = vector.extract_strided_slice %2 {offsets = [4, 0], sizes = [1, 256], strides = [1, 1]} : vector<9x256xf32> to vector<1x256xf32>
    %77 = vector.broadcast %76 : vector<1x256xf32> to vector<8x256xf32>
    %78 = arith.mulf %55, %77 : vector<8x256xf32>
    %c32_33 = arith.constant 32 : index
    %c0_34 = arith.constant 0 : index
    %79 = vector.load %arg11[%c32_33, %c0_34] : memref<72x256xf32, #tpu.memory_space<vmem>>, vector<8x256xf32>
    tpu.vector_store %arg11[%c32_33, %c0_34], %78 {strides = array<i32>} : memref<72x256xf32, #tpu.memory_space<vmem>>, vector<8x256xf32>,
    %c255_i32_35 = arith.constant 255 : i32
    %80 = tpu.dynamic_rotate %55 by %c255_i32_35 dim 1 : vector<8x256xf32>, i32 -> vector<8x256xf32>
    %81 = vector.extract_strided_slice %2 {offsets = [5, 0], sizes = [1, 256], strides = [1, 1]} : vector<9x256xf32> to vector<1x256xf32>
    %82 = vector.broadcast %81 : vector<1x256xf32> to vector<8x256xf32>
    %83 = arith.mulf %80, %82 : vector<8x256xf32>
    %c40 = arith.constant 40 : index
    %c0_36 = arith.constant 0 : index
    %84 = vector.load %arg11[%c40, %c0_36] : memref<72x256xf32, #tpu.memory_space<vmem>>, vector<8x256xf32>
    tpu.vector_store %arg11[%c40, %c0_36], %83 {strides = array<i32>} : memref<72x256xf32, #tpu.memory_space<vmem>>, vector<8x256xf32>,
    %c241_i32_37 = arith.constant 241 : i32
    %85 = tpu.dynamic_rotate %55 by %c241_i32_37 dim 1 : vector<8x256xf32>, i32 -> vector<8x256xf32>
    %86 = vector.extract_strided_slice %2 {offsets = [6, 0], sizes = [1, 256], strides = [1, 1]} : vector<9x256xf32> to vector<1x256xf32>
    %87 = vector.broadcast %86 : vector<1x256xf32> to vector<8x256xf32>
    %88 = arith.mulf %85, %87 : vector<8x256xf32>
    %c48 = arith.constant 48 : index
    %c0_38 = arith.constant 0 : index
    %89 = vector.load %arg11[%c48, %c0_38] : memref<72x256xf32, #tpu.memory_space<vmem>>, vector<8x256xf32>
    tpu.vector_store %arg11[%c48, %c0_38], %88 {strides = array<i32>} : memref<72x256xf32, #tpu.memory_space<vmem>>, vector<8x256xf32>,
    %c240_i32_39 = arith.constant 240 : i32
    %90 = tpu.dynamic_rotate %55 by %c240_i32_39 dim 1 : vector<8x256xf32>, i32 -> vector<8x256xf32>
    %91 = vector.extract_strided_slice %2 {offsets = [7, 0], sizes = [1, 256], strides = [1, 1]} : vector<9x256xf32> to vector<1x256xf32>
    %92 = vector.broadcast %91 : vector<1x256xf32> to vector<8x256xf32>
    %93 = arith.mulf %90, %92 : vector<8x256xf32>
    %c56 = arith.constant 56 : index
    %c0_40 = arith.constant 0 : index
    %94 = vector.load %arg11[%c56, %c0_40] : memref<72x256xf32, #tpu.memory_space<vmem>>, vector<8x256xf32>
    tpu.vector_store %arg11[%c56, %c0_40], %93 {strides = array<i32>} : memref<72x256xf32, #tpu.memory_space<vmem>>, vector<8x256xf32>,
    %c239_i32_41 = arith.constant 239 : i32
    %95 = tpu.dynamic_rotate %55 by %c239_i32_41 dim 1 : vector<8x256xf32>, i32 -> vector<8x256xf32>
    %96 = vector.extract_strided_slice %2 {offsets = [8, 0], sizes = [1, 256], strides = [1, 1]} : vector<9x256xf32> to vector<1x256xf32>
    %97 = vector.broadcast %96 : vector<1x256xf32> to vector<8x256xf32>
    %98 = arith.mulf %95, %97 : vector<8x256xf32>
    %c64 = arith.constant 64 : index
    %c0_42 = arith.constant 0 : index
    %99 = vector.load %arg11[%c64, %c0_42] : memref<72x256xf32, #tpu.memory_space<vmem>>, vector<8x256xf32>
    tpu.vector_store %arg11[%c64, %c0_42], %98 {strides = array<i32>} : memref<72x256xf32, #tpu.memory_space<vmem>>, vector<8x256xf32>,
    %c0_43 = arith.constant 0 : index
    %c0_44 = arith.constant 0 : index
    %100 = vector.load %arg5[%c0_43, %c0_44] : memref<8x72xbf16, #tpu.memory_space<vmem>>, vector<8x72xbf16>
    %c0_45 = arith.constant 0 : index
    %c0_46 = arith.constant 0 : index
    %101 = vector.load %arg11[%c0_45, %c0_46] : memref<72x256xf32, #tpu.memory_space<vmem>>, vector<72x256xf32>
    %102 = arith.truncf %101 : vector<72x256xf32> to vector<72x256xbf16>
    %cst_47 = arith.constant dense<0.000000e+00> : vector<8x256xf32>
    %103 = tpu.matmul %100, %102, %cst_47 {dimension_numbers = #tpu.dot_dimension_numbers<[1], [0], [0], [1], [0, 0, 1, 1], [], []>} : vector<8x72xbf16>, vector<72x256xbf16>, vector<8x256xf32> -> vector<8x256xf32>
    %c0_48 = arith.constant 0 : index
    %c0_49 = arith.constant 0 : index
    %104 = vector.load %arg6[%c0_48, %c0_49] : memref<8x1xf32, #tpu.memory_space<vmem>>, vector<8x1xf32>
    %105 = vector.broadcast %104 : vector<8x1xf32> to vector<8x256xf32>
    %106 = arith.addf %103, %105 : vector<8x256xf32>
    %c0_50 = arith.constant 0 : index
    %c0_51 = arith.constant 0 : index
    %107 = vector.load %arg7[%c0_50, %c0_51] : memref<8x4xbf16, #tpu.memory_space<vmem>>, vector<8x4xbf16>
    %108 = arith.truncf %1 : vector<4x256xf32> to vector<4x256xbf16>
    %cst_52 = arith.constant dense<0.000000e+00> : vector<8x256xf32>
    %109 = tpu.matmul %107, %108, %cst_52 {dimension_numbers = #tpu.dot_dimension_numbers<[1], [0], [0], [1], [0, 0, 1, 1], [], []>} : vector<8x4xbf16>, vector<4x256xbf16>, vector<8x256xf32> -> vector<8x256xf32>
    %c0_53 = arith.constant 0 : index
    %c0_54 = arith.constant 0 : index
    %110 = vector.load %arg8[%c0_53, %c0_54] : memref<8x1xf32, #tpu.memory_space<vmem>>, vector<8x1xf32>
    %111 = vector.broadcast %110 : vector<8x1xf32> to vector<8x256xf32>
    %112 = arith.addf %109, %111 : vector<8x256xf32>
    %113 = arith.addf %112, %106 : vector<8x256xf32>
    %cst_55 = arith.constant 0.000000e+00 : f32
    %114 = vector.broadcast %cst_55 : f32 to vector<8x256xf32>
    %115 = arith.maximumf %113, %114 : vector<8x256xf32>
    %c0_56 = arith.constant 0 : index
    %c0_57 = arith.constant 0 : index
    %c0_58 = arith.constant 0 : index
    %116 = vector.load %arg9[%c0_56, %c0_57, %c0_58] : memref<1x8x256xf32, #tpu.memory_space<vmem>>, vector<1x8x256xf32>
    %117 = vector.shape_cast %116 : vector<1x8x256xf32> to vector<8x256xf32>
    %118 = vector.shape_cast %115 : vector<8x256xf32> to vector<1x8x256xf32>
    tpu.vector_store %arg9[%c0_56, %c0_57, %c0_58], %118 {strides = array<i32>} : memref<1x8x256xf32, #tpu.memory_space<vmem>>, vector<1x8x256xf32>,
    return
  }
  func.func @transform_0(%arg0: i32) -> (i32, i32, i32) {
    %c0_i32 = arith.constant 0 : i32
    %c0_i32_0 = arith.constant 0 : i32
    %c0_i32_1 = arith.constant 0 : i32
    return %arg0, %c0_i32, %c0_i32_0 : i32, i32, i32
  }
  func.func @transform_1(%arg0: i32) -> (i32, i32) {
    %c0_i32 = arith.constant 0 : i32
    %c0_i32_0 = arith.constant 0 : i32
    %c0_i32_1 = arith.constant 0 : i32
    return %c0_i32, %c0_i32_0 : i32, i32
  }
  func.func @transform_2(%arg0: i32) -> (i32, i32) {
    %c0_i32 = arith.constant 0 : i32
    %c0_i32_0 = arith.constant 0 : i32
    %c0_i32_1 = arith.constant 0 : i32
    return %c0_i32, %c0_i32_0 : i32, i32
  }
  func.func @transform_3(%arg0: i32) -> (i32, i32) {
    %c0_i32 = arith.constant 0 : i32
    %c0_i32_0 = arith.constant 0 : i32
    %c0_i32_1 = arith.constant 0 : i32
    return %c0_i32, %c0_i32_0 : i32, i32
  }
  func.func @transform_4(%arg0: i32) -> (i32, i32) {
    %c0_i32 = arith.constant 0 : i32
    %c0_i32_0 = arith.constant 0 : i32
    %c0_i32_1 = arith.constant 0 : i32
    return %c0_i32, %c0_i32_0 : i32, i32
  }
  func.func @transform_5(%arg0: i32) -> (i32, i32) {
    %c0_i32 = arith.constant 0 : i32
    %c0_i32_0 = arith.constant 0 : i32
    %c0_i32_1 = arith.constant 0 : i32
    return %c0_i32, %c0_i32_0 : i32, i32
  }
  func.func @transform_6(%arg0: i32) -> (i32, i32) {
    %c0_i32 = arith.constant 0 : i32
    %c0_i32_0 = arith.constant 0 : i32
    %c0_i32_1 = arith.constant 0 : i32
    return %c0_i32, %c0_i32_0 : i32, i32
  }
  func.func @transform_7(%arg0: i32) -> (i32, i32) {
    %c0_i32 = arith.constant 0 : i32
    %c0_i32_0 = arith.constant 0 : i32
    %c0_i32_1 = arith.constant 0 : i32
    return %c0_i32, %c0_i32_0 : i32, i32
  }
  func.func @transform_8(%arg0: i32) -> (i32, i32, i32) {
    %c0_i32 = arith.constant 0 : i32
    %c0_i32_0 = arith.constant 0 : i32
    %c0_i32_1 = arith.constant 0 : i32
    return %arg0, %c0_i32, %c0_i32_0 : i32, i32, i32
  }
}

</mosaic_0001>

<bundles_post_ra>
// kernel: tpu_custom_call.1
= control target key start
LH: loop header
LB: loop body
LE: loop exit
PB: predicated region body
PF: predicated region fallthrough
CT: control target
= control target key end

     0   :  { %s1583_s0 = inlined_call_operand.hbm [shape: f32[2,4,256], index: 0, kind: input, shape index: {}]   ;;  %s1584_s1 = inlined_call_operand.vmem [shape: f32[9,256], index: 1, kind: input, shape index: {}]   ;;  %s1585_s2 = inlined_call_operand.hbm [shape: bf16[8,36], index: 2, kind: input, shape index: {}]   ;;  %s1586_s3 = inlined_call_operand.vmem [shape: f32[8,1], index: 3, kind: input, shape index: {}]   ;;  %s1587_s4 = inlined_call_operand.vmem [shape: bf16[8,72], index: 4, kind: input, shape index: {}]   ;;  %s1588_s5 = inlined_call_operand.vmem [shape: f32[8,1], index: 5, kind: input, shape index: {}]   ;;  %s1589_s6 = inlined_call_operand.vmem [shape: bf16[8,4], index: 6, kind: input, shape index: {}]   ;;  %s1590_s7 = inlined_call_operand.vmem [shape: f32[8,1], index: 7, kind: input, shape index: {}]   ;;  %s1591_s8 = inlined_call_operand.hbm [shape: f32[2,8,256], index: 8, kind: output, shape index: {}]  }
   0x1   :  { %1592 = sst [smem:[#allocation14_spill]] %s1585_s2 }
   0x2   :  { %13 = vsyncpa [#allocation5], 0 }
   0x3   :  { %15 = vsyncpa [#allocation5 + $0x1], 0 }
   0x4   :  { %16 = vsyncpa [#allocation8], 0 }
   0x5   :  { %17 = vsyncpa [#allocation6], 0 }
   0x6   :  { %19 = vsyncpa [#allocation6 + $0x1], 0  ;;  %s1184_s27 = smov 0   ;;  %s1186_s28 = smov 0  }
   0x7   :  { %s1188_s29 = smov 0   ;;  %s1190_s30 = smov 0  }
   0x8 LB: > { %s1205_s9 = sadd.s32 4294967295, %s1127_s30   ;;  %s903_s10 = sadd.s32 4294967294, %s1127_s30   ;;  %s1127_s30 = sphi %s1190_s30, %s1605_s30   ;;  %s1123_s29 = sphi %s1188_s29, %s1604_s29   ;;  %s1119_s28 = sphi %s1186_s28, %s1603_s28   ;;  %s1115_s27 = sphi %s1184_s27, %s1602_s27  }
   0x9   : > { %p45_p0 = scmp.ne.s32.totalorder %s1119_s28, %s1115_s27  ;;  %p46_p1 = scmp.eq.s32.totalorder %s1205_s9, 0 }
   0xa   : > { %p216_p2 = scmp.eq.s32.totalorder %s1205_s9, 1  ;;  %p222_p3 = scmp.eq.s32.totalorder %s903_s10, 1 }
   0xb   : > { %p1214_p4 = por %p46_p1, %p45_p0  ;;  %p904_p5 = scmp.ge.s32.totalorder %s1127_s30, 1 }
   0xc   : > { %p1219_p6 = por %p222_p3, %p45_p0  ;;  %p229_p7 = scmp.lt.s32.totalorder %s1127_s30, 3 }
   0xd   : > { %s1595_s2 = sld [smem:[#allocation14_spill]]  ;;  %s1129_s17 = smov [#allocation7]  }
   0xe   : > { %p1227_p8 = pnand %p904_p5, %p229_p7  ;;  %s246_s18 = sshll.u32 %s1129_s17, 4  ;;  %s247_s18 = int_to_ptr.vmem [resolvable:$true] %s246_s18 }
   0xf   : > { %s1237_s19 = sadd.s32 1, %s1127_s30   ;;  %s32_s20 = sadd.s32 1, %s1123_s29 }
  0x10   : > { %p935_p10 = pneg %p1227_p8  ;;  %s29_s21 = ssub.s32 %s1127_s30, %s1237_s19 }
  0x11   : > { %p30_p12 = scmp.eq.s32.totalorder %s29_s21, 0  ;;  %p39_p13 = scmp.ne.s32.totalorder %s1123_s29, %s1119_s28 }
  0x12   : > { %p936_p11 = pnand %p935_p10, %p46_p1  ;;  %p40_p0 = scmp.eq.s32.totalorder %s1127_s30, 0 }
  0x13   : > { %s244_s15 = sshll.u32 %s1595_s2, 4  ;;  %p1250_p3 = por %p216_p2, %p39_p13  ;;  %s245_s15 = int_to_ptr.hbm [resolvable:$true] %s244_s15 }
  0x14   : > { %938 = dma.hbm_to_vmem [thread:$0]  (!%p936_p11), %s245_s15, 64, %s247_s18, [#allocation8]  }
  0x15   : > { %s1246_s22 = scalar_select %p30_p12, %s1123_s29, %s32_s20  }
  0x16   : > { %p948_p5 = scmp.lt.s32.totalorder %s1127_s30, 2  ;;  %s272_s24 = sand.u32 1, %s1123_s29  }
  0x17   : > { %1597 = sst [smem:[#allocation13_spill]] %s1246_s22  ;;  %s925_s25 = sshll.u32 %s1127_s30, 3 }
  0x18   : > { %p41_p7 = por %p40_p0, %p39_p13  ;;  %s907_s26 = sshll.u32 %s272_s24, 3 }
  0x19   : > { %s281_s14 = scalar_lea.hbm %s1583_s0, %s925_s25  ;;  %s276_s17 = scalar_lea.vmem [#allocation4], %s907_s26 }
  0x1a   : > { %s283_s15 = sshll.u32 %s281_s14, 4  ;;  %s285_s18 = sshll.u32 %s276_s17, 4  ;;  %s284_s15 = int_to_ptr.hbm [resolvable:$true] %s283_s15  ;;  %s286_s18 = int_to_ptr.vmem [resolvable:$true] %s285_s18 }
  0x1b   : > { %p1260_p10 = pnand %p948_p5, %p41_p7  ;;  %s273_s21 = scalar_lea.sflag [#allocation5], %s272_s24 }
  0x1c   : > { %s1027_s2 = sshra.s32 %s284_s15, 4  ;;  %s1034_s26 = scalar_lea.hbm %s1583_s0, 16  ;;  %s1028_s2 = int_to_ptr.hbm [resolvable:$true] %s1027_s2 }
  0x1d   : > { %s1029_s22 = scalar_lea.hbm %s1028_s2, 8  ;;  %p1031_p11 = pneg %p1260_p10 }
  0x1e   : > { %p1030_p2 = scmp.ne.s32.totalorder %s1028_s2, %s1029_s22  ;;  %p1035_p0 = scmp.lt.s32.totalorder %s1028_s2, %s1583_s0 }
  0x1f   : > { %p1036_p5 = scmp.lt.s32.totalorder %s1034_s26, %s1029_s22 }
  0x20   : > { %p1032_p12 = pnand %p1031_p11, %p1030_p2 }
  0x21   : > { %p1037_p7 = por %p1036_p5, %p1035_p0 }
  0x22   : > { %p1033_p13 = pneg %p1032_p12 }
  0x24   : > { %p1038_p9 = pnand %p1037_p7, %p1033_p13 }
  0x26   : > { %1041 = shalt.err (!%p1038_p9)
}
  0x27   : > { %942 = dma.hbm_to_vmem [thread:$0]  (!%p1260_p10), %s284_s15, 128, %s286_s18, %s273_s21  }
  0x28   : > { %294 = sbr.rel (%p1227_p8) target bundleno = 706 (0x2c2), region = 52  ;;  %s1277_s24 = sand.u32 (!%p1227_p8), 1, %s1119_s28  }
  0x29   : > { %s911_s17 = sshll.u32 (!%p1227_p8), %s1277_s24, 3  ;;  %s297_s25 = scalar_lea.sflag (!%p1227_p8), [#allocation5], %s1277_s24 }
  0x2a   : > { %s300_s10 = scalar_lea.vmem (!%p1227_p8), [#allocation4], %s911_s17 }
  0x2d   : > { %1102 = dma.done.wait (%p1214_p4), %s297_s25, 128  }
  0x2e   : > { %1104 = vsyncadd (%p1214_p4), %s297_s25, 4294967168 }
  0x2f   : > { %1106 = dma.done.wait (%p46_p1), [#allocation8], 64  }
  0x30   : > { %1108 = vsyncadd (%p46_p1), [#allocation8], 4294967232  ;;  %v340_v0 = vld [vmem:[%s300_s10] sm:$0xff]  ;;  %v1292_v3 = vld [vmem:[%s1584_s1 + $0x8] sm:$0xff]  ;;  %s1130_s11 = smov 16   ;;  %vm437_vm0 = vcmask 1043456   ;;  %v355_v26 = vlaneseq }
  0x31   : > { %346 = vst [vmem:[#allocation1] ss:$2 sm:$0xff] %v340_v0  ;;  %v433_v6 = vperm.slane %v1292_v3, 4  ;;  %v1300_v7 = vld [vmem:[%s1584_s1] sm:$0xff]  ;;  %s1131_s18 = smov 1   ;;  %s1132_s20 = smov 127  }
  0x32   : > { %v432_v8 = vperm.slane %v1300_v7, 4  ;;  %s1133_s21 = smov 113   ;;  %s1134_s26 = smov 112   ;;  %v1322_v27 = vand.u32 127, %v355_v26  ;;  %v378_v29 = vperm.slane %v1300_v7, 1  ;;  %v379_v30 = vperm.slane %v1292_v3, 1 }
  0x33   : > { %v436_v9 = vrot.slane %v433_v6, 4  ;;  %s1135_s13 = smov 111   ;;  %s1136_s14 = smov 17   ;;  %v420_v38 = vperm.slane %v1300_v7, 3  ;;  %v421_v39 = vperm.slane %v1292_v3, 3  ;;  %v503_v49 = vperm.slane %v1300_v7, 7 }
  0x34   : > { %s1137_s17 = smov 15   ;;  %vm375_vm1 = vcmp.lt.s32.totalorder %v1322_v27, 16  ;;  %vm417_vm2 = vcmp.lt.s32.totalorder %v1322_v27, 1  ;;  %vm500_vm3 = vcmp.lt.s32.totalorder %v1322_v27, 112  ;;  %v504_v50 = vperm.slane %v1292_v3, 7  ;;  %s807_s10 = scalar_lea.sflag [#allocation6], %s1277_s24 }
  0x35   : > { %v438_v12 = vsel %vm437_vm0, %v432_v8, %v436_v9  ;;  %vm458_vm4 = vcmp.lt.s32.totalorder %v1322_v27, 127  ;;  %v461_v59 = vperm.slane %v1300_v7, 5  ;;  %v462_v60 = vperm.slane %v1292_v3, 5 }
  0x36   : > { %v440_v13 = vmul.f32 %v438_v12, %v340_v0  ;;  %vm482_vm5 = vcmp.lt.s32.totalorder %v1322_v27, 113  ;;  %v486_v9 = vperm.slane %v1292_v3, 6  ;;  %vm524_vm6 = vcmp.lt.s32.totalorder %v1322_v27, 111 }
  0x37   : > { %vm357_vm7 = vcmp.lt.s32.totalorder %v1322_v27, 17  ;;  %vm560_vm8 = vcmask 1041408   ;;  %vm399_vm9 = vcmp.lt.s32.totalorder %v1322_v27, 15  ;;  %vm556_vm10 = vcmask 293888   ;;  %v679_v27 = vld [vmem:[%s1587_s4] sm:$0xf] }
  0x38   : > { %v347_v1 = vld.sshfl [vmem:[#allocation1] sm:$0xff pattern:$0x75316420]  ;;  %v348_v2 = vld.sshfl [vmem:[#allocation1 + $0x8] sm:$0xff pattern:$0x75316420] }
  0x39   : > { %366 = vst [vmem:[#allocation1] ss:$2 sm:$0xff] %v340_v0  ;;  %vm764_vm11 = vcmask 31744   ;;  %vm714_vm12 = vcmask 588800  }
  0x40   : > { %v367_v4 = vld.sshfl [vmem:[#allocation1] sm:$0xff pattern:$0x75316420]  ;;  %v368_v5 = vld.sshfl [vmem:[#allocation1 + $0x8] sm:$0xff pattern:$0x75316420] }
  0x41   : > { %390 = vst [vmem:[#allocation1] ss:$2 sm:$0xff] %v340_v0  ;;  %373 = vrot.lane.b32.xlu0 %v368_v5, %s1130_s11  ;;  %371 = vrot.lane.b32.xlu2 %v367_v4, %s1130_s11  ;;  %v485_v5 = vperm.slane %v1300_v7, 6 }
  0x48   : > { %v391_v10 = vld.sshfl [vmem:[#allocation1] sm:$0xff pattern:$0x75316420]  ;;  %v392_v11 = vld.sshfl [vmem:[#allocation1 + $0x8] sm:$0xff pattern:$0x75316420] }
  0x49   : > { %408 = vst [vmem:[#allocation1] ss:$2 sm:$0xff] %v340_v0 }
  0x50   : > { %v409_v14 = vld.sshfl [vmem:[#allocation1] sm:$0xff pattern:$0x75316420]  ;;  %v410_v15 = vld.sshfl [vmem:[#allocation1 + $0x8] sm:$0xff pattern:$0x75316420] }
  0x51   : > { %413 = vrot.lane.b32.xlu1 %v409_v14, %s1131_s18  ;;  %442 = vst [vmem:[#allocation1] ss:$2 sm:$0xff] %v440_v13  ;;  %415 = vrot.lane.b32.xlu2 %v410_v15, %s1131_s18 }
  0x58   : > { %v443_v16 = vld.sshfl [vmem:[#allocation1] sm:$0xff pattern:$0x75316420]  ;;  %v444_v17 = vld.sshfl [vmem:[#allocation1 + $0x8] sm:$0xff pattern:$0x75316420] }
  0x59   : > { %447 = vst [vmem:[#allocation2 + $0x48] sm:$0xf] %v443_v16 }
  0x5a   : > { %448 = vst [vmem:[#allocation2 + $0x28] sm:$0xf] %v444_v17  ;;  %v1383_v17 = vld [vmem:[%s1584_s1 + $0x10] ss:$0 sm:$0xff] }
  0x5b   : > { %449 = vst [vmem:[#allocation1] ss:$2 sm:$0xff] %v340_v0 }
  0x62   : > { %v450_v18 = vld.sshfl [vmem:[#allocation1] sm:$0xff pattern:$0x75316420]  ;;  %v451_v19 = vld.sshfl [vmem:[#allocation1 + $0x8] sm:$0xff pattern:$0x75316420] }
  0x63   : > { %454 = vrot.lane.b32.xlu1 %v450_v18, %s1132_s20  ;;  %473 = vst [vmem:[#allocation1] ss:$2 sm:$0xff] %v340_v0  ;;  %v1388_v18 = vld [vmem:[%s1584_s1 + $0x18] ss:$0 sm:$0xff] }
  0x6a   : > { %v475_v20 = vld.sshfl [vmem:[#allocation1 + $0x8] sm:$0xff pattern:$0x75316420]  ;;  %v474_v21 = vld.sshfl [vmem:[#allocation1] sm:$0xff pattern:$0x75316420] }
  0x6b   : > { %456 = vrot.lane.b32.xlu1 %v451_v19, %s1132_s20  ;;  %478 = vrot.lane.b32.xlu0 %v474_v21, %s1133_s21  ;;  %491 = vst [vmem:[#allocation1] ss:$2 sm:$0xff] %v340_v0 }
  0x72   : > { %v492_v22 = vld.sshfl [vmem:[#allocation1] sm:$0xff pattern:$0x75316420]  ;;  %v493_v23 = vld.sshfl [vmem:[#allocation1 + $0x8] sm:$0xff pattern:$0x75316420] }
  0x73   : > { %480 = vrot.lane.b32.xlu1 %v475_v20, %s1133_s21  ;;  %515 = vst [vmem:[#allocation1] ss:$2 sm:$0xff] %v340_v0  ;;  %496 = vrot.lane.b32.xlu2 %v492_v22, %s1134_s26 }
  0x7a   : > { %v516_v24 = vld.sshfl [vmem:[#allocation1] sm:$0xff pattern:$0x75316420]  ;;  %v517_v25 = vld.sshfl [vmem:[#allocation1 + $0x8] sm:$0xff pattern:$0x75316420] }
  0x7b   : > { %520 = vrot.lane.b32.xlu0 %v516_v24, %s1135_s13  ;;  %751 = vst [vmem:[#allocation1] ss:$2 sm:$0xff] %v340_v0  ;;  %498 = vrot.lane.b32.xlu2 %v493_v23, %s1134_s26  ;;  %v550_v24 = vld [vmem:[%s1586_s3] sm:$0xff] }
  0x7c   : > { %353 = vrot.lane.b32.xlu1 %v348_v2, %s1136_s14 }
  0x83   : > { %522 = vrot.lane.b32.xlu0 %v517_v25, %s1135_s13  ;;  %395 = vrot.lane.b32.xlu2 %v391_v10, %s1137_s17  ;;  %v1138_v25 = vmov 0  }
  0x84   : > { %993 = vset.pattern.permute.xlu1 %v1138_v25  ;;  %994 = vset.pattern.permute.xlu0 %v1138_v25 }
  0x85   : > { %553 = vperm.xlu1 %993, %v550_v24  }
  0x8b   : > { %351 = vrot.lane.b32.xlu0 %v347_v1, %s1136_s14 }
  0x93   : > { %397 = vrot.lane.b32.xlu0 %v392_v11, %s1137_s17 }
  0x9b   : > { %v372_v28 = vpop.permute.xlu2 %371 }
  0xab   : > { %v416_v41 = vpop.permute.xlu2 %415 }
  0xb3   : > { %v374_v31 = vpop.permute.xlu0 %373 }
  0xb4   : > { %v376_v32 = vsel %vm375_vm1, %v372_v28, %v374_v31  ;;  %v377_v33 = vsel %vm375_vm1, %v374_v31, %v372_v28  ;;  %v360_v28 = vperm.slane %v1300_v7, 0  ;;  %v361_v31 = vperm.slane %v1292_v3, 0 }
  0xb5   : > { %v380_v34 = vmul.f32 %v378_v29, %v377_v33  ;;  %v381_v35 = vmul.f32 %v379_v30, %v376_v32 }
  0xb7   : > { %v384_v36 = vrot.slane %v380_v34, 4  ;;  %v385_v37 = vrot.slane %v381_v35, 4 }
  0xb9   : > { %388 = vst [vmem:[#allocation2 + $0x30] sm:$0xf0] %v384_v36 }
  0xba   : > { %389 = vst [vmem:[#allocation2] sm:$0xf0] %v385_v37 }
  0xc3   : > { %v414_v40 = vpop.permute.xlu1 %413 }
  0xc4   : > { %v418_v42 = vsel %vm417_vm2, %v414_v40, %v416_v41  ;;  %v419_v43 = vsel %vm417_vm2, %v416_v41, %v414_v40 }
  0xc5   : > { %v422_v44 = vmul.f32 %v420_v38, %v419_v43  ;;  %v423_v45 = vmul.f32 %v421_v39, %v418_v42 }
  0xc7   : > { %v426_v46 = vrot.slane %v422_v44, 4  ;;  %v427_v47 = vrot.slane %v423_v45, 4  ;;  %v402_v45 = vperm.slane %v1300_v7, 2 }
  0xc9   : > { %430 = vst [vmem:[#allocation2 + $0x18] sm:$0xf0] %v426_v46  ;;  %v403_v46 = vperm.slane %v1292_v3, 2 }
  0xca   : > { %431 = vst [vmem:[#allocation2 + $0x10] sm:$0xf0] %v427_v47 }
  0xcd   : > { %v497_v48 = vpop.permute.xlu2 %496 }
  0xd5   : > { %v455_v51 = vpop.permute.xlu1 %454  ;;  %v499_v52 = vpop.permute.xlu2 %498 }
  0xd6   : > { %v501_v53 = vsel %vm500_vm3, %v497_v48, %v499_v52  ;;  %v502_v54 = vsel %vm500_vm3, %v499_v52, %v497_v48 }
  0xd7   : > { %v505_v55 = vmul.f32 %v503_v49, %v501_v53  ;;  %v506_v56 = vmul.f32 %v504_v50, %v502_v54 }
  0xd9   : > { %v509_v57 = vrot.slane %v505_v55, 4  ;;  %v510_v58 = vrot.slane %v506_v56, 4 }
  0xdb   : > { %513 = vst [vmem:[#allocation2 + $0x8] sm:$0xf0] %v509_v57 }
  0xdc   : > { %514 = vst [vmem:[#allocation2 + $0x20] sm:$0xf0] %v510_v58 }
  0xdd   : > { %v457_v61 = vpop.permute.xlu1 %456  ;;  %v479_v10 = vpop.permute.xlu0 %478 }
  0xde   : > { %v459_v62 = vsel %vm458_vm4, %v455_v51, %v457_v61  ;;  %v460_v63 = vsel %vm458_vm4, %v457_v61, %v455_v51  ;;  %v396_v44 = vpop.permute.xlu2 %395 }
  0xdf   : > { %v463_v0 = vmul.f32 %v461_v59, %v459_v62  ;;  %v464_v1 = vmul.f32 %v462_v60, %v460_v63 }
  0xe1   : > { %v467_v2 = vrot.slane %v463_v0, 4  ;;  %v468_v4 = vrot.slane %v464_v1, 4 }
  0xe3   : > { %471 = vst [vmem:[#allocation2 + $0x48] sm:$0xf0] %v467_v2 }
  0xe4   : > { %472 = vst [vmem:[#allocation2 + $0x28] sm:$0xf0] %v468_v4 }
  0xe5   : > { %v481_v11 = vpop.permute.xlu1 %480 }
  0xe6   : > { %v483_v12 = vsel %vm482_vm5, %v479_v10, %v481_v11  ;;  %v484_v13 = vsel %vm482_vm5, %v481_v11, %v479_v10  ;;  %v533_v11 = vld [vmem:[#allocation7] sm:$0xf] }
  0xe7   : > { %v487_v14 = vmul.f32 %v485_v5, %v483_v12  ;;  %v488_v15 = vmul.f32 %v486_v9, %v484_v13  ;;  %v752_v12 = vld.sshfl [vmem:[#allocation1] sm:$0xff pattern:$0x75316420]  ;;  %v753_v13 = vld.sshfl [vmem:[#allocation1 + $0x8] sm:$0xff pattern:$0x75316420] }
  0xe9   : > { %489 = vst [vmem:[#allocation2 + $0x8] sm:$0xf] %v487_v14  ;;  %v756_v14 = vpack.c.bf16 %v752_v12, %v752_v12 }
  0xea   : > { %490 = vst [vmem:[#allocation2 + $0x20] sm:$0xf] %v488_v15  ;;  %v538_v47 = vld [vmem:[#allocation2 + $0x48] sm:$0xff]  ;;  %v757_v15 = vpack.c.bf16 %v753_v13, %v753_v13 }
  0xeb   : > { %v539_v52 = vld [vmem:[#allocation2 + $0x28] sm:$0xff] }
  0xed   : > { %v521_v16 = vpop.permute.xlu0 %520 }
  0xee   : > { %v354_v26 = vpop.permute.xlu1 %353 }
  0xf0   : > { %v540_v48 = vld [vmem:[#allocation2 + $0x8] sm:$0xff] }
  0xf1   : > { %v541_v53 = vld [vmem:[#allocation2 + $0x20] sm:$0xff]  ;;  %v546_v57 = vpack.c.bf16 %v540_v48, %v538_v47 }
  0xf2   : > { %v547_v62 = vpack.c.bf16 %v541_v53, %v539_v52 }
  0xf5   : > { %v523_v19 = vpop.permute.xlu0 %522 }
  0xf6   : > { %v525_v20 = vsel %vm524_vm6, %v521_v16, %v523_v19  ;;  %v526_v21 = vsel %vm524_vm6, %v523_v19, %v521_v16  ;;  %v769_v19 = vsel %vm560_vm8, %v756_v14, 0 }
  0xf7   : > { %v529_v22 = vmul.f32 %v1383_v17, %v525_v20  ;;  %v530_v23 = vmul.f32 %v1388_v18, %v526_v21  ;;  %v554_v16 = vpop.permute.xlu1 %553  ;;  %v772_v20 = vsel %vm560_vm8, %v757_v15, 0 }
  0xf9   : > { %531 = vst [vmem:[#allocation2 + $0x40] sm:$0xf] %v529_v22  ;;  %v750_v22 = vld [vmem:[%s1589_s6] sm:$0xf] }
  0xfa   : > { %532 = vst [vmem:[#allocation2 + $0x38] sm:$0xf] %v530_v23 }
  0xfd   : > { %v352_v32 = vpop.permute.xlu0 %351 }
  0xfe   : > { %v358_v33 = vsel %vm357_vm7, %v352_v32, %v354_v26  ;;  %v359_v34 = vsel %vm357_vm7, %v354_v26, %v352_v32 }
  0xff   : > { %v362_v35 = vmul.f32 %v360_v28, %v359_v34  ;;  %v363_v36 = vmul.f32 %v361_v31, %v358_v33 }
 0x100   : > { %v542_v37 = vld [vmem:[#allocation2 + $0x40] sm:$0xf] }
 0x101   : > { %364 = vst [vmem:[#allocation2 + $0x30] sm:$0xf] %v362_v35  ;;  %v548_v40 = vpack.c.bf16 %v542_v37, %v542_v37  ;;  %v543_v41 = vld [vmem:[#allocation2 + $0x38] sm:$0xf] }
 0x102   : > { %365 = vst [vmem:[#allocation2] sm:$0xf] %v363_v36  ;;  %v549_v42 = vpack.c.bf16 %v543_v41, %v543_v41  ;;  %v758_v35 = vld [vmem:[%s1590_s7] sm:$0xff] }
 0x103   : > { %v562_v43 = vsel %vm560_vm8, %v548_v40, 0 }
 0x104   : > { %572 = vmatpush.bf16.msra.mxu0 %v562_v43  ;;  %v565_v51 = vsel %vm560_vm8, %v549_v42, 0 }
 0x105   : > { %585 = vmatpush.bf16.msra.mxu1 %v565_v51  ;;  %v398_v54 = vpop.permute.xlu0 %397 }
 0x106   : > { %v400_v55 = vsel %vm399_vm9, %v396_v44, %v398_v54  ;;  %v401_v56 = vsel %vm399_vm9, %v398_v54, %v396_v44 }
 0x107   : > { %v404_v58 = vmul.f32 %v402_v45, %v401_v56  ;;  %v405_v61 = vmul.f32 %v403_v46, %v400_v55 }
 0x108   : > { %573 = vmatpush.bf16.msra.mxu0 %v546_v57  ;;  %v534_v63 = vld [vmem:[#allocation2 + $0x30] sm:$0xff] }
 0x109   : > { %406 = vst [vmem:[#allocation2 + $0x18] sm:$0xf] %v404_v58  ;;  %586 = vmatpush.bf16.msra.mxu1 %v547_v62  ;;  %v535_v2 = vld [vmem:[#allocation2] sm:$0xff] }
 0x10a   : > { %407 = vst [vmem:[#allocation2 + $0x10] sm:$0xf] %v405_v61 }
 0x110   : > { %v536_v0 = vld [vmem:[#allocation2 + $0x18] sm:$0xff] }
 0x111   : > { %v544_v1 = vpack.c.bf16 %v536_v0, %v534_v63  ;;  %v537_v4 = vld [vmem:[#allocation2 + $0x10] sm:$0xff]  ;;  %v708_v63 = vld [vmem:[%s1588_s5] sm:$0xff] }
 0x112   : > { %v545_v10 = vpack.c.bf16 %v537_v4, %v535_v2 }
 0x113   : > { %574 = vmatpush.bf16.msra.mxu0 %v544_v1 }
 0x114   : > { %587 = vmatpush.bf16.msra.mxu1 %v545_v10 }
 0x116   : > { %914 = vmatmul.msk.bf16.vlgmr.msra.gmra.mxu0 %vm556_vm10, %v533_v11 }
 0x117   : > { %915 = vmatmul.msk.bf16.vlgmr.msra.gmra.mxu1 %vm556_vm10, %v533_v11  ;;  %781 = vmatpush.bf16.msrb.mxu0 %v769_v19 }
 0x118   : > { %794 = vmatpush.bf16.msrb.mxu1 %v772_v20 }
 0x126   : > { %918 = vmatmul.msk.bf16.vlgmr.msrb.gmra.mxu0 %vm764_vm11, %v750_v22 }
 0x127   : > { %919 = vmatmul.msk.bf16.vlgmr.msrb.gmra.mxu1 %vm764_vm11, %v750_v22 }
 0x193   : > { %v576_v21 = vpop.f32.mrf.mxu0 }
 0x194   : > { %v577_v23 = vadd.f32 %v576_v21, %v554_v16  ;;  %v589_v24 = vpop.f32.mrf.mxu1 }
 0x195   : > { %v590_v25 = vadd.f32 %v589_v24, %v554_v16 }
 0x196   : > { %v1428_v26 = vmax.f32 %v577_v23, 0.0 }
 0x197   : > { %v1430_v32 = vmax.f32 %v590_v25, 0.0 }
 0x198   : > { %649 = vrot.lane.b32.xlu1 %v1428_v26, %s1133_s21  ;;  %669 = vrot.lane.b32.xlu2 %v1428_v26, %s1135_s13  ;;  %v635_v19 = vmul.f32 %v1428_v26, %v432_v8 }
 0x199   : > { %671 = vrot.lane.b32.xlu0 %v1430_v32, %s1135_s13  ;;  %v636_v20 = vmul.f32 %v1430_v32, %v433_v6 }
 0x19b   : > { %v578_v33 = vpop.f32.mrf.mxu0 }
 0x19c   : > { %v591_v34 = vpop.f32.mrf.mxu1 }
 0x1a0   : > { %661 = vrot.lane.b32.xlu1 %v1430_v32, %s1134_s26  ;;  %651 = vrot.lane.b32.xlu2 %v1430_v32, %s1133_s21 }
 0x1a1   : > { %659 = vrot.lane.b32.xlu0 %v1428_v26, %s1134_s26  ;;  %s1077_s26 = scalar_lea.hbm %s1591_s8, 32 }
 0x1a3   : > { %v1479_v61 = vpop.f32.mrf.mxu0 }
 0x1a4   : > { %v1485_v62 = vpop.f32.mrf.mxu1 }
 0x1a8   : > { %615 = vrot.lane.b32.xlu1 %v1428_v26, %s1137_s17  ;;  %639 = vrot.lane.b32.xlu2 %v1428_v26, %s1132_s20 }
 0x1a9   : > { %641 = vrot.lane.b32.xlu0 %v1430_v32, %s1132_s20 }
 0x1ab   : > { %v785_v15 = vpop.f32.mrf.mxu0 }
 0x1ac   : > { %v798_v16 = vpop.f32.mrf.mxu1 }
 0x1b0   : > { %627 = vrot.lane.b32.xlu1 %v1430_v32, %s1131_s18  ;;  %617 = vrot.lane.b32.xlu2 %v1430_v32, %s1137_s17  ;;  %s926_s17 = sshll.u32 %s1205_s9, 4 }
 0x1b1   : > { %625 = vrot.lane.b32.xlu0 %v1428_v26, %s1131_s18  ;;  %s818_s22 = scalar_lea.hbm %s1591_s8, %s926_s17 }
 0x1b2   : > { %s822_s25 = sshll.u32 %s818_s22, 4  ;;  %s823_s25 = int_to_ptr.hbm [resolvable:$true] %s822_s25 }
 0x1b3   : > { %s1071_s21 = sshra.s32 %s823_s25, 4  ;;  %s1072_s21 = int_to_ptr.hbm [resolvable:$true] %s1071_s21 }
 0x1b4   : > { %s1073_s20 = scalar_lea.hbm %s1072_s21, 16  ;;  %p1078_p9 = scmp.lt.s32.totalorder %s1072_s21, %s1591_s8 }
 0x1b5   : > { %p1074_p1 = scmp.ne.s32.totalorder %s1072_s21, %s1073_s20  ;;  %p1079_p10 = scmp.lt.s32.totalorder %s1077_s26, %s1073_s20 }
 0x1b7   : > { %p1075_p4 = pnand %p1074_p1, %p1250_p3  ;;  %p1080_p2 = por %p1079_p10, %p1078_p9 }
 0x1b8   : > { %605 = vrot.lane.b32.xlu1 %v1428_v26, %s1130_s11  ;;  %595 = vrot.lane.b32.xlu2 %v1428_v26, %s1136_s14 }
 0x1b9   : > { %597 = vrot.lane.b32.xlu0 %v1430_v32, %s1136_s14  ;;  %s913_s14 = sshll.u32 %s1277_s24, 4  ;;  %p1076_p8 = pneg %p1075_p4 }
 0x1ba   : > { %s338_s15 = scalar_lea.vmem [#allocation9], %s913_s14 }
 0x1bb   : > { %s820_s9 = sshll.u32 %s338_s15, 4  ;;  %p1081_p11 = pnand %p1080_p2, %p1076_p8  ;;  %s821_s9 = int_to_ptr.vmem [resolvable:$true] %s820_s9 }
 0x1c0   : > { %761 = vperm.xlu1 %993, %v758_v35   ;;  %607 = vrot.lane.b32.xlu2 %v1430_v32, %s1130_s11 }
 0x1c1   : > { %711 = vperm.xlu0 %994, %v708_v63  }
 0x1f2   : > { %v670_v36 = vpop.permute.xlu2 %669 }
 0x1fa   : > { %v652_v37 = vpop.permute.xlu2 %651 }
 0x202   : > { %v640_v42 = vpop.permute.xlu2 %639 }
 0x20a   : > { %v650_v40 = vpop.permute.xlu1 %649  ;;  %v618_v10 = vpop.permute.xlu2 %617 }
 0x20b   : > { %v672_v41 = vpop.permute.xlu0 %671  ;;  %v653_v55 = vsel %vm482_vm5, %v650_v40, %v652_v37  ;;  %v654_v56 = vsel %vm482_vm5, %v652_v37, %v650_v40 }
 0x20c   : > { %v673_v43 = vsel %vm524_vm6, %v670_v36, %v672_v41  ;;  %v674_v44 = vsel %vm524_vm6, %v672_v41, %v670_v36  ;;  %v655_v0 = vmul.f32 %v653_v55, %v485_v5  ;;  %v656_v1 = vmul.f32 %v654_v56, %v486_v9 }
 0x20d   : > { %v675_v47 = vmul.f32 %v1383_v17, %v673_v43  ;;  %v676_v48 = vmul.f32 %v1388_v18, %v674_v44 }
 0x20f   : > { %v706_v51 = vpack.c.bf16 %v675_v47, %v675_v47  ;;  %v707_v52 = vpack.c.bf16 %v676_v48, %v676_v48 }
 0x211   : > { %v719_v53 = vsel %vm437_vm0, %v706_v51, 0  ;;  %v722_v54 = vsel %vm437_vm0, %v707_v52, 0 }
 0x212   : > { %727 = vmatpush.bf16.msra.mxu2 %v719_v53  ;;  %740 = vmatpush.bf16.msra.mxu3 %v722_v54  ;;  %v662_v57 = vpop.permute.xlu1 %661  ;;  %v596_v23 = vpop.permute.xlu2 %595 }
 0x213   : > { %v660_v58 = vpop.permute.xlu0 %659 }
 0x214   : > { %v663_v17 = vsel %vm500_vm3, %v660_v58, %v662_v57  ;;  %v664_v18 = vsel %vm500_vm3, %v662_v57, %v660_v58 }
 0x215   : > { %v665_v2 = vmul.f32 %v663_v17, %v503_v49  ;;  %v666_v4 = vmul.f32 %v664_v18, %v504_v50 }
 0x217   : > { %v704_v11 = vpack.c.bf16 %v665_v2, %v655_v0  ;;  %v705_v12 = vpack.c.bf16 %v666_v4, %v656_v1 }
 0x219   : > { %728 = vmatpush.bf16.msra.mxu2 %v704_v11  ;;  %741 = vmatpush.bf16.msra.mxu3 %v705_v12 }
 0x21a   : > { %v616_v13 = vpop.permute.xlu1 %615  ;;  %v608_v37 = vpop.permute.xlu2 %607 }
 0x21b   : > { %v642_v14 = vpop.permute.xlu0 %641  ;;  %v619_v24 = vsel %vm399_vm9, %v616_v13, %v618_v10 }
 0x21c   : > { %v643_v5 = vsel %vm458_vm4, %v640_v42, %v642_v14  ;;  %v644_v9 = vsel %vm458_vm4, %v642_v14, %v640_v42  ;;  %v622_v32 = vmul.f32 %v619_v24, %v403_v46 }
 0x21d   : > { %v645_v49 = vmul.f32 %v643_v5, %v461_v59  ;;  %v646_v50 = vmul.f32 %v644_v9, %v462_v60  ;;  %v620_v59 = vsel %vm399_vm9, %v618_v10, %v616_v13 }
 0x21e   : > { %v621_v6 = vmul.f32 %v620_v59, %v402_v45 }
 0x21f   : > { %v702_v21 = vpack.c.bf16 %v645_v49, %v635_v19  ;;  %v703_v22 = vpack.c.bf16 %v646_v50, %v636_v20 }
 0x221   : > { %729 = vmatpush.bf16.msra.mxu2 %v702_v21  ;;  %742 = vmatpush.bf16.msra.mxu3 %v703_v22 }
 0x222   : > { %v628_v60 = vpop.permute.xlu1 %627 }
 0x223   : > { %v626_v25 = vpop.permute.xlu0 %625 }
 0x224   : > { %v629_v8 = vsel %vm417_vm2, %v626_v25, %v628_v60  ;;  %v630_v26 = vsel %vm417_vm2, %v628_v60, %v626_v25 }
 0x225   : > { %v631_v33 = vmul.f32 %v630_v26, %v420_v38  ;;  %v632_v34 = vmul.f32 %v629_v8, %v421_v39 }
 0x227   : > { %v700_v35 = vpack.c.bf16 %v631_v33, %v621_v6  ;;  %v701_v36 = vpack.c.bf16 %v632_v34, %v622_v32 }
 0x229   : > { %730 = vmatpush.bf16.msra.mxu2 %v700_v35  ;;  %743 = vmatpush.bf16.msra.mxu3 %v701_v36 }
 0x22a   : > { %v606_v40 = vpop.permute.xlu1 %605 }
 0x22b   : > { %v598_v41 = vpop.permute.xlu0 %597  ;;  %v609_v42 = vsel %vm375_vm1, %v606_v40, %v608_v37  ;;  %v610_v45 = vsel %vm375_vm1, %v608_v37, %v606_v40 }
 0x22c   : > { %v599_v38 = vsel %vm357_vm7, %v596_v23, %v598_v41  ;;  %v600_v39 = vsel %vm357_vm7, %v598_v41, %v596_v23  ;;  %v611_v46 = vmul.f32 %v610_v45, %v378_v29  ;;  %v612_v43 = vmul.f32 %v609_v42, %v379_v30 }
 0x22d   : > { %v601_v44 = vmul.f32 %v600_v39, %v360_v28  ;;  %v602_v47 = vmul.f32 %v599_v38, %v361_v31 }
 0x22f   : > { %v698_v48 = vpack.c.bf16 %v611_v46, %v601_v44  ;;  %v699_v51 = vpack.c.bf16 %v612_v43, %v602_v47 }
 0x231   : > { %731 = vmatpush.bf16.msra.mxu2 %v698_v48  ;;  %744 = vmatpush.bf16.msra.mxu3 %v699_v51 }
 0x232   : > { %v762_v29 = vpop.permute.xlu1 %761 }
 0x233   : > { %v712_v30 = vpop.permute.xlu0 %711  ;;  %v784_v3 = vadd.f32 %v1479_v61, %v762_v29  ;;  %v797_v31 = vadd.f32 %v1485_v62, %v762_v29 }
 0x234   : > { %916 = vmatmul.msk.bf16.vlgmr.msra.gmra.mxu2 %vm714_vm12, %v679_v27  ;;  %917 = vmatmul.msk.bf16.vlgmr.msra.gmra.mxu3 %vm714_vm12, %v679_v27 }
 0x2b7   : > { %v733_v7 = vpop.f32.mrf.mxu2  ;;  %v746_v28 = vpop.f32.mrf.mxu3 }
 0x2b8   : > { %v734_v52 = vadd.f32 %v733_v7, %v712_v30  ;;  %v747_v53 = vadd.f32 %v746_v28, %v712_v30 }
 0x2ba   : > { %v800_v54 = vadd.f32 %v784_v3, %v734_v52  ;;  %v801_v55 = vadd.f32 %v797_v31, %v747_v53 }
 0x2bc   : > { %v802_v56 = vmax.f32 %v800_v54, 0.0  ;;  %v803_v57 = vmax.f32 %v801_v55, 0.0 }
 0x2be   : > { %804 = vst [vmem:[%s338_s15] sm:$0xff] %v802_v56 }
 0x2bf   : > { %805 = vst [vmem:[%s338_s15 + $0x8] sm:$0xff] %v803_v57  ;;  %v735_v58 = vpop.f32.mrf.mxu2  ;;  %v748_v17 = vpop.f32.mrf.mxu3 }
 0x2c0   : > { %1084 = shalt.err (!%p1081_p11)
}
 0x2c1   : > { %933 = dma.vmem_to_hbm [thread:$0]  (%p1250_p3), %s821_s9, 256, %s823_s25, %s807_s10  }
 0x2c2 PF: > { %s834_s24 = sand.u32 1, %s1115_s27   ;;  %p1600_p12 = scmp.ge.s32.totalorder %s1127_s30, 2 }
 0x2c3   : > { %s835_s17 = scalar_lea.sflag [#allocation6], %s834_s24 }
 0x2c4   : > { %p944_p13 = pnand %p1600_p12, %p1219_p6 }
 0x2c6   : > { %p945_p0 = pneg %p944_p13 }
 0x2c8   : > { %1110 = dma.done.wait (%p945_p0), %s835_s17, 256  }
 0x2c9   : > { %1112 = vsyncadd (%p945_p0), %s835_s17, 4294967040  ;;  %s1601_s2 = sld [smem:[#allocation13_spill]]  ;;  %p22_p5 = scmp.ge.s32.totalorder %s1237_s19, 4  }
 0x2ca   : > { %s1602_s27 = smov %s1119_s28  ;;  %s1603_s28 = smov %s1123_s29 }
 0x2cb   : > { %s1605_s30 = smov %s1237_s19  ;;  %24 = sbr.rel (!%p22_p5) target bundleno = 8 (0x8), region = 101 }
 0x2cf   : > { %s1604_s29 = smov %s1601_s2 }
 0x2d0   :  { %841 = vsyncpa [#allocation5], 1 }
 0x2d1   :  { %843 = vsyncpa [#allocation5 + $0x1], 1 }
 0x2d2   :  { %844 = vsyncpa [#allocation8], 1 }
 0x2d3   :  { %845 = vsyncpa [#allocation6], 1 }
 0x2d4   :  { %847 = vsyncpa [#allocation6 + $0x1], 1 }

</bundles_post_ra>
